<compile_context>
chip_gen: v6e
topology: v6e:2x2x1
jax: 0.10.0
libtpu: 0.0.40
codegen_flags: <defaults>
</compile_context>

<pallas_src>
import functools

import numpy as np
import jax
import jax.numpy as jnp
from jax import lax
from jax.experimental import pallas as pl
from jax.experimental.pallas import tpu as pltpu


# ---------------------------------------------------------------------------
# In-kernel helpers
# ---------------------------------------------------------------------------
def _row_taker(x_ref, stride):
    """x_ref block: (1, 1, stride, R, C_in); phase p holds rows p, p+stride, ...

    Returns take(offset, n) -> (n, C_in) rows [offset, offset+stride, ...] of the
    original (haloed) window -- always a contiguous slice of one phase."""
    phases = [x_ref[0, 0, p] for p in range(stride)]

    def take(offset, n):
        p, q0 = offset % stride, offset // stride
        return phases[p][q0:q0 + n]

    return take


def _tap_matmul(taps, wf, c_per_tap, fold):
    """sum_k taps[k] @ wf[k*c:(k+1)*c] with f32 accumulation on the MXU.

    fold=True: build one (rows, 3*c) im2col operand and do a single matmul
    (better MXU K-occupancy when c < 128).  fold=False: three matmuls, with
    the accumulator initialized from the first tap (no zeros + add)."""
    if fold:
        return jnp.dot(jnp.concatenate(taps, axis=-1), wf,
                       preferred_element_type=jnp.float32)
    acc = jnp.dot(taps[0], wf[0:c_per_tap], preferred_element_type=jnp.float32)
    for k in (1, 2):
        acc = acc + jnp.dot(taps[k], wf[k * c_per_tap:(k + 1) * c_per_tap],
                            preferred_element_type=jnp.float32)
    return acc


def _conv_core(take, w1f, w2f, *, stride, tl, l_out, cin, cmid, fold1, fold2):
    """conv1(k=3, stride, pad=1) -> relu -> conv2(k=3, stride=1, pad=1).

    Returns (tl, C_out) f32 pre-shortcut activations for this L-tile."""
    n_h = tl + 2                       # conv1 rows needed: tile + 1-row halo each side
    taps1 = [take(k, n_h) for k in range(3)]
    h = _tap_matmul(taps1, w1f, cin, fold1)              # (tl+2, cmid) f32

    # Zero every conv1 row whose global index falls outside [0, l_out): this is
    # both conv2's zero padding at the sequence ends and the mask for the tail
    # of a partial last tile.  ReLU is fused into the same select.
    j0 = pl.program_id(1) * tl
    q = lax.broadcasted_iota(jnp.int32, (n_h, 1), 0)
    m = j0 - 1 + q
    valid = jnp.logical_and(m >= 0, m < l_out)
    h = jnp.where(valid, jnp.maximum(h, 0.0), 0.0).astype(jnp.bfloat16)

    # conv2: halo rows are already present in h, so the taps are plain shifted
    # slices -- no zero-row concatenate / extra VMEM copy.
    taps2 = [h[k:k + tl] for k in range(3)]
    return _tap_matmul(taps2, w2f, cmid, fold2)          # (tl, cout) f32


# ---------------------------------------------------------------------------
# Kernel bodies
# ---------------------------------------------------------------------------
def _kernel_identity(x_ref, w1f_ref, w2f_ref, o_ref, *,
                     stride, tl, l_out, cin, cmid, fold1, fold2):
    take = _row_taker(x_ref, stride)
    o = _conv_core(take, w1f_ref[...], w2f_ref[...],
                   stride=stride, tl=tl, l_out=l_out, cin=cin, cmid=cmid,
                   fold1=fold1, fold2=fold2)
    sc = take(stride + 1, tl)                            # identity: x rows j (stride==1)
    o_ref[0] = jnp.maximum(o + sc.astype(jnp.float32), 0.0)


def _kernel_proj(x_ref, w1f_ref, w2f_ref, wsc_ref, bias_ref, o_ref, *,
                 stride, tl, l_out, cin, cmid, fold1, fold2):
    take = _row_taker(x_ref, stride)
    o = _conv_core(take, w1f_ref[...], w2f_ref[...],
                   stride=stride, tl=tl, l_out=l_out, cin=cin, cmid=cmid,
                   fold1=fold1, fold2=fold2)
    # 1x1 strided conv with eval-mode BatchNorm folded into weight + bias.
    xs = take(stride + 1, tl)                            # rows j*stride of x
    sc = jnp.dot(xs, wsc_ref[...], preferred_element_type=jnp.float32)
    sc = sc + bias_ref[...]
    o_ref[0] = jnp.maximum(o + sc, 0.0)


# ---------------------------------------------------------------------------
# Wrapper: layout, halo/phase windowing, BN folding, BlockSpecs
# ---------------------------------------------------------------------------
def basic_block_forward(x_ncl, params, stride, *, tile_l=256):
    """x_ncl: (N, C_in, L) float32, PyTorch Conv1d layout.  Returns (N, C_out, L_out)."""
    n, cin, length = x_ncl.shape
    w1, w2 = params["w1"], params["w2"]
    cout = w1.shape[-1]
    cmid = cout
    l_out = (length + 2 - 3) // stride + 1
    use_proj = (stride != 1) or (cin != cout)

    # ----- L tiling: `tl` output rows per grid step.
    tl = min(tile_l, l_out)
    if tl < l_out:
        tl = max(8, (tl // 8) * 8)          # keep the output block sublane-aligned
    n_tiles = pl.cdiv(l_out, tl)
    # Rows needed per phase of the (haloed) input window.
    r_rows = tl + 2 + 2 // stride

    # ----- bf16 activations for the MXU; f32 accumulation happens in-kernel.
    x_nlc = jnp.transpose(x_ncl, (0, 2, 1)).astype(jnp.bfloat16)
    # left pad = stride (halo) + 1 (conv1 padding); right pad so every window fits.
    right = (n_tiles - 1) * tl * stride + r_rows * stride - (stride + 1) - length
    assert right >= 0
    x_ext = jnp.pad(x_nlc, ((0, 0), (stride + 1, right), (0, 0)))
    # Per-tile windows, de-interleaved into `stride` phases (done once, in HBM,
    # by XLA): win[n, t, p, q] = x_ext[n, t*tl*stride + p + q*stride].
    row_idx = (np.arange(n_tiles)[:, None, None] * (tl * stride)
               + np.arange(stride)[None, :, None]
               + np.arange(r_rows)[None, None, :] * stride)
    x_win = x_ext[:, row_idx, :]            # (N, n_tiles, stride, r_rows, C_in)

    # ----- fold the 3 taps into the contraction dim when channels are small.
    fold1 = cin < 128
    fold2 = cmid < 128
    w1f = w1.reshape(3 * cin, cout).astype(jnp.bfloat16)
    w2f = w2.reshape(3 * cmid, cout).astype(jnp.bfloat16)

    x_spec = pl.BlockSpec((1, 1, stride, r_rows, cin), lambda i, t: (i, t, 0, 0, 0))
    w1_spec = pl.BlockSpec((3 * cin, cout), lambda i, t: (0, 0))
    w2_spec = pl.BlockSpec((3 * cmid, cout), lambda i, t: (0, 0))
    out_spec = pl.BlockSpec((1, tl, cout), lambda i, t: (i, t, 0))
    out_shape = jax.ShapeDtypeStruct((n, n_tiles * tl, cout), jnp.float32)

    common = dict(stride=stride, tl=tl, l_out=l_out, cin=cin, cmid=cmid,
                  fold1=fold1, fold2=fold2)
    if use_proj:
        # Fold eval-mode BatchNorm1d into the 1x1 projection.
        # TODO(synk): training-mode batch statistics (mean/var over N,L) not implemented.
        scale = params["gamma"] * lax.rsqrt(params["var"] + 1e-5)
        wsc_f = (params["wsc"] * scale[None, :]).astype(jnp.bfloat16)
        bias_f = (params["beta"] - params["mean"] * scale).reshape(1, cout)
        bias_f = bias_f.astype(jnp.float32)
        kfn = functools.partial(_kernel_proj, **common)
        in_specs = [x_spec, w1_spec, w2_spec,
                    pl.BlockSpec((cin, cout), lambda i, t: (0, 0)),
                    pl.BlockSpec((1, cout), lambda i, t: (0, 0))]
        inputs = (x_win, w1f, w2f, wsc_f, bias_f)
    else:
        kfn = functools.partial(_kernel_identity, **common)
        in_specs = [x_spec, w1_spec, w2_spec]
        inputs = (x_win, w1f, w2f)

    out = pl.pallas_call(
        kfn,
        grid=(n, n_tiles),
        in_specs=in_specs,
        out_specs=out_spec,
        out_shape=out_shape,
        compiler_params=pltpu.CompilerParams(
            dimension_semantics=("parallel", "parallel"),
            vmem_limit_bytes=64 * 1024 * 1024,
        ),
    )(*inputs)
    out = out[:, :l_out, :]                 # drop padded tail rows of the last tile
    return jnp.transpose(out, (0, 2, 1))    # back to NCL, f32


# ---------------------------------------------------------------------------
# Deterministic parameter init (shapes from BasicBlock.__init__)
# ---------------------------------------------------------------------------
def init_params(key, in_planes, planes, stride):
    k1, k2, k3, k4, k5 = jax.random.split(key, 5)
    p = {
        "w1": 0.1 * jax.random.normal(k1, (3, in_planes, planes), jnp.float32),
        "w2": 0.1 * jax.random.normal(k2, (3, planes, planes), jnp.float32),
    }
    if stride != 1 or in_planes != planes:
        p["wsc"] = 0.1 * jax.random.normal(k3, (in_planes, planes), jnp.float32)
        p["gamma"] = 1.0 + 0.1 * jax.random.normal(k4, (planes,), jnp.float32)
        p["beta"] = 0.1 * jax.random.normal(k5, (planes,), jnp.float32)
        p["mean"] = jnp.zeros((planes,), jnp.float32)   # BatchNorm1d running_mean init
        p["var"] = jnp.ones((planes,), jnp.float32)     # BatchNorm1d running_var init
    return p


# ---------------------------------------------------------------------------
# Pure-JAX f32 reference (correctness check only)
# ---------------------------------------------------------------------------
def ref_forward(x_ncl, params, stride):
    x = jnp.transpose(x_ncl, (0, 2, 1)).astype(jnp.float32)

    def conv(a, w, s, p):
        return lax.conv_general_dilated(a, w, (s,), [(p, p)],
                                        dimension_numbers=("NWC", "WIO", "NWC"))

    h = jax.nn.relu(conv(x, params["w1"], stride, 1))
    o = conv(h, params["w2"], 1, 1)
    cin = x.shape[-1]
    cout = params["w1"].shape[-1]
    if stride != 1 or cin != cout:
        sc = conv(x, params["wsc"][None], stride, 0)
        sc = ((sc - params["mean"]) * lax.rsqrt(params["var"] + 1e-5)
              * params["gamma"] + params["beta"])
    else:
        sc = x
    return jnp.transpose(jax.nn.relu(o + sc), (0, 2, 1))


if __name__ == "__main__":
    key = jax.random.PRNGKey(0)
    kx, kp1, kp2, kx3, kp4, kx4 = jax.random.split(key, 6)

    # bf16 MXU operands -> compare against the f32 reference with bf16 tolerance.
    TOL = dict(atol=5e-2, rtol=5e-2)

    # PyTorch-style input: (batch, in_planes, length)
    x = jax.random.normal(kx, (2, 4, 16), jnp.float32)

    # Case 1: projection shortcut (in_planes=4 -> planes=8, stride=2), fold path.
    p1 = init_params(kp1, 4, 8, 2)
    y1 = basic_block_forward(x, p1, 2)
    jax.block_until_ready(y1)
    assert y1.shape == (2, 8, 8)
    r1 = ref_forward(x, p1, 2)
    assert jnp.allclose(y1, r1, **TOL), float(jnp.max(jnp.abs(y1 - r1)))

    # Case 2: identity shortcut (in_planes=planes=4, stride=1), fold path.
    p2 = init_params(kp2, 4, 4, 1)
    y2 = basic_block_forward(x, p2, 1)
    jax.block_until_ready(y2)
    assert y2.shape == (2, 4, 16)
    r2 = ref_forward(x, p2, 1)
    assert jnp.allclose(y2, r2, **TOL), float(jnp.max(jnp.abs(y2 - r2)))

    # Case 3: longer sequence exercising the multi-tile (haloed) L grid.
    x3 = jax.random.normal(kx3, (2, 4, 80), jnp.float32)
    y3 = basic_block_forward(x3, p1, 2, tile_l=16)
    jax.block_until_ready(y3)
    assert y3.shape == (2, 8, 40)
    r3 = ref_forward(x3, p1, 2)
    assert jnp.allclose(y3, r3, **TOL), float(jnp.max(jnp.abs(y3 - r3)))

    # Case 4: wide channels (128 -> 128, stride=2) exercising the non-fold
    # (3-matmul, accumulator-init) path.
    p4 = init_params(kp4, 128, 128, 2)
    x4 = jax.random.normal(kx4, (1, 128, 32), jnp.float32)
    y4 = basic_block_forward(x4, p4, 2)
    jax.block_until_ready(y4)
    assert y4.shape == (1, 128, 16)
    r4 = ref_forward(x4, p4, 2)
    assert jnp.allclose(y4, r4, **TOL), float(jnp.max(jnp.abs(y4 - r4)))

    print("KERNEL_OK")
</pallas_src>

<mosaic_0001>
module attributes {stable_mosaic.version = 11 : i64} {
  func.func @_kernel_proj(%arg0: i32, %arg1: i32, %arg2: memref<1x1x2x11x4xbf16, #tpu.memory_space<vmem>>, %arg3: memref<12x8xbf16, #tpu.memory_space<vmem>>, %arg4: memref<24x8xbf16, #tpu.memory_space<vmem>>, %arg5: memref<4x8xbf16, #tpu.memory_space<vmem>>, %arg6: memref<1x8xf32, #tpu.memory_space<vmem>>, %arg7: memref<1x8x8xf32, #tpu.memory_space<vmem>>) attributes {dimension_semantics = [#tpu.dimension_semantics<parallel>, #tpu.dimension_semantics<parallel>], iteration_bounds = array<i64: 2, 1>, scalar_prefetch = 0 : i64, scratch_operands = 0 : i64, tpu.core_type = #tpu.core_type<tc>, window_params = [{transform_indices = @transform_0, window_bounds = array<i64: 1, 1, 2, 11, 4>}, {pipeline_mode = #tpu.pipeline_mode<synchronous>, transform_indices = @transform_1, window_bounds = array<i64: 12, 8>}, {pipeline_mode = #tpu.pipeline_mode<synchronous>, transform_indices = @transform_2, window_bounds = array<i64: 24, 8>}, {pipeline_mode = #tpu.pipeline_mode<synchronous>, transform_indices = @transform_3, window_bounds = array<i64: 4, 8>}, {pipeline_mode = #tpu.pipeline_mode<synchronous>, transform_indices = @transform_4, window_bounds = array<i64: 1, 8>}, {transform_indices = @transform_5, window_bounds = array<i64: 1, 8, 8>}]} {
    %c0 = arith.constant 0 : index
    %c0_0 = arith.constant 0 : index
    %c0_1 = arith.constant 0 : index
    %c0_2 = arith.constant 0 : index
    %c0_3 = arith.constant 0 : index
    %0 = vector.load %arg2[%c0, %c0_0, %c0_1, %c0_2, %c0_3] : memref<1x1x2x11x4xbf16, #tpu.memory_space<vmem>>, vector<1x1x1x11x4xbf16>
    %1 = vector.shape_cast %0 : vector<1x1x1x11x4xbf16> to vector<11x4xbf16>
    %c0_4 = arith.constant 0 : index
    %c0_5 = arith.constant 0 : index
    %c1 = arith.constant 1 : index
    %c0_6 = arith.constant 0 : index
    %c0_7 = arith.constant 0 : index
    %2 = vector.load %arg2[%c0_4, %c0_5, %c1, %c0_6, %c0_7] : memref<1x1x2x11x4xbf16, #tpu.memory_space<vmem>>, vector<1x1x1x11x4xbf16>
    %3 = vector.shape_cast %2 : vector<1x1x1x11x4xbf16> to vector<11x4xbf16>
    %c0_8 = arith.constant 0 : index
    %c0_9 = arith.constant 0 : index
    %4 = vector.load %arg3[%c0_8, %c0_9] : memref<12x8xbf16, #tpu.memory_space<vmem>>, vector<12x8xbf16>
    %c0_10 = arith.constant 0 : index
    %c0_11 = arith.constant 0 : index
    %5 = vector.load %arg4[%c0_10, %c0_11] : memref<24x8xbf16, #tpu.memory_space<vmem>>, vector<24x8xbf16>
    %6 = vector.extract_strided_slice %1 {offsets = [0, 0], sizes = [10, 4], strides = [1, 1]} : vector<11x4xbf16> to vector<10x4xbf16>
    %7 = vector.extract_strided_slice %3 {offsets = [0, 0], sizes = [10, 4], strides = [1, 1]} : vector<11x4xbf16> to vector<10x4xbf16>
    %8 = vector.extract_strided_slice %1 {offsets = [1, 0], sizes = [10, 4], strides = [1, 1]} : vector<11x4xbf16> to vector<10x4xbf16>
    %9 = tpu.concatenate %6, %7, %8 in 1 : vector<10x4xbf16>, vector<10x4xbf16>, vector<10x4xbf16> -> vector<10x12xbf16>
    %cst = arith.constant dense<0.000000e+00> : vector<10x8xf32>
    %10 = tpu.matmul %9, %4, %cst {dimension_numbers = #tpu.dot_dimension_numbers<[1], [0], [0], [1], [0, 0, 1, 1], [], []>} : vector<10x12xbf16>, vector<12x8xbf16>, vector<10x8xf32> -> vector<10x8xf32>
    %c8_i32 = arith.constant 8 : i32
    %11 = arith.muli %arg1, %c8_i32 : i32
    %12 = tpu.iota {dimensions = array<i32: 0>} : vector<10x1xi32>
    %c1_i32 = arith.constant 1 : i32
    %13 = arith.subi %11, %c1_i32 : i32
    %14 = vector.broadcast %13 : i32 to vector<10x1xi32>
    %15 = arith.addi %14, %12 : vector<10x1xi32>
    %c0_i32 = arith.constant 0 : i32
    %16 = vector.broadcast %c0_i32 : i32 to vector<10x1xi32>
    %17 = arith.cmpi sge, %15, %16 : vector<10x1xi32>
    %c8_i32_12 = arith.constant 8 : i32
    %18 = vector.broadcast %c8_i32_12 : i32 to vector<10x1xi32>
    %19 = arith.cmpi slt, %15, %18 : vector<10x1xi32>
    %20 = arith.andi %17, %19 : vector<10x1xi1>
    %cst_13 = arith.constant 0.000000e+00 : f32
    %21 = vector.broadcast %cst_13 : f32 to vector<10x8xf32>
    %22 = arith.maximumf %10, %21 : vector<10x8xf32>
    %cst_14 = arith.constant 0.000000e+00 : f32
    %23 = vector.shape_cast %20 : vector<10x1xi1> to vector<10x1xi1>
    %24 = vector.broadcast %23 : vector<10x1xi1> to vector<10x8xi1>
    %25 = vector.broadcast %cst_14 : f32 to vector<10x8xf32>
    %26 = arith.select %24, %22, %25 : vector<10x8xi1>, vector<10x8xf32>
    %27 = arith.truncf %26 : vector<10x8xf32> to vector<10x8xbf16>
    %28 = vector.extract_strided_slice %27 {offsets = [0, 0], sizes = [8, 8], strides = [1, 1]} : vector<10x8xbf16> to vector<8x8xbf16>
    %29 = vector.extract_strided_slice %27 {offsets = [1, 0], sizes = [8, 8], strides = [1, 1]} : vector<10x8xbf16> to vector<8x8xbf16>
    %30 = vector.extract_strided_slice %27 {offsets = [2, 0], sizes = [8, 8], strides = [1, 1]} : vector<10x8xbf16> to vector<8x8xbf16>
    %31 = tpu.concatenate %28, %29, %30 in 1 : vector<8x8xbf16>, vector<8x8xbf16>, vector<8x8xbf16> -> vector<8x24xbf16>
    %cst_15 = arith.constant dense<0.000000e+00> : vector<8x8xf32>
    %32 = tpu.matmul %31, %5, %cst_15 {dimension_numbers = #tpu.dot_dimension_numbers<[1], [0], [0], [1], [0, 0, 1, 1], [], []>} : vector<8x24xbf16>, vector<24x8xbf16>, vector<8x8xf32> -> vector<8x8xf32>
    %33 = vector.extract_strided_slice %3 {offsets = [1, 0], sizes = [8, 4], strides = [1, 1]} : vector<11x4xbf16> to vector<8x4xbf16>
    %c0_16 = arith.constant 0 : index
    %c0_17 = arith.constant 0 : index
    %34 = vector.load %arg5[%c0_16, %c0_17] : memref<4x8xbf16, #tpu.memory_space<vmem>>, vector<4x8xbf16>
    %cst_18 = arith.constant dense<0.000000e+00> : vector<8x8xf32>
    %35 = tpu.matmul %33, %34, %cst_18 {dimension_numbers = #tpu.dot_dimension_numbers<[1], [0], [0], [1], [0, 0, 1, 1], [], []>} : vector<8x4xbf16>, vector<4x8xbf16>, vector<8x8xf32> -> vector<8x8xf32>
    %c0_19 = arith.constant 0 : index
    %c0_20 = arith.constant 0 : index
    %36 = vector.load %arg6[%c0_19, %c0_20] : memref<1x8xf32, #tpu.memory_space<vmem>>, vector<1x8xf32>
    %37 = vector.broadcast %36 : vector<1x8xf32> to vector<8x8xf32>
    %38 = arith.addf %35, %37 : vector<8x8xf32>
    %39 = arith.addf %32, %38 : vector<8x8xf32>
    %cst_21 = arith.constant 0.000000e+00 : f32
    %40 = vector.broadcast %cst_21 : f32 to vector<8x8xf32>
    %41 = arith.maximumf %39, %40 : vector<8x8xf32>
    %c0_22 = arith.constant 0 : index
    %c0_23 = arith.constant 0 : index
    %c0_24 = arith.constant 0 : index
    %42 = vector.load %arg7[%c0_22, %c0_23, %c0_24] : memref<1x8x8xf32, #tpu.memory_space<vmem>>, vector<1x8x8xf32>
    %43 = vector.shape_cast %42 : vector<1x8x8xf32> to vector<8x8xf32>
    %44 = vector.shape_cast %41 : vector<8x8xf32> to vector<1x8x8xf32>
    tpu.vector_store %arg7[%c0_22, %c0_23, %c0_24], %44 {strides = array<i32>} : memref<1x8x8xf32, #tpu.memory_space<vmem>>, vector<1x8x8xf32>,
    return
  }
  func.func @transform_0(%arg0: i32, %arg1: i32) -> (i32, i32, i32, i32, i32) {
    %c0_i32 = arith.constant 0 : i32
    %c0_i32_0 = arith.constant 0 : i32
    %c0_i32_1 = arith.constant 0 : i32
    %c0_i32_2 = arith.constant 0 : i32
    return %arg0, %arg1, %c0_i32, %c0_i32_0, %c0_i32_1 : i32, i32, i32, i32, i32
  }
  func.func @transform_1(%arg0: i32, %arg1: i32) -> (i32, i32) {
    %c0_i32 = arith.constant 0 : i32
    %c0_i32_0 = arith.constant 0 : i32
    %c0_i32_1 = arith.constant 0 : i32
    return %c0_i32, %c0_i32_0 : i32, i32
  }
  func.func @transform_2(%arg0: i32, %arg1: i32) -> (i32, i32) {
    %c0_i32 = arith.constant 0 : i32
    %c0_i32_0 = arith.constant 0 : i32
    %c0_i32_1 = arith.constant 0 : i32
    return %c0_i32, %c0_i32_0 : i32, i32
  }
  func.func @transform_3(%arg0: i32, %arg1: i32) -> (i32, i32) {
    %c0_i32 = arith.constant 0 : i32
    %c0_i32_0 = arith.constant 0 : i32
    %c0_i32_1 = arith.constant 0 : i32
    return %c0_i32, %c0_i32_0 : i32, i32
  }
  func.func @transform_4(%arg0: i32, %arg1: i32) -> (i32, i32) {
    %c0_i32 = arith.constant 0 : i32
    %c0_i32_0 = arith.constant 0 : i32
    %c0_i32_1 = arith.constant 0 : i32
    return %c0_i32, %c0_i32_0 : i32, i32
  }
  func.func @transform_5(%arg0: i32, %arg1: i32) -> (i32, i32, i32) {
    %c0_i32 = arith.constant 0 : i32
    %c0_i32_0 = arith.constant 0 : i32
    return %arg0, %arg1, %c0_i32 : i32, i32, i32
  }
}

</mosaic_0001>

<bundles_post_ra>
// kernel: tpu_custom_call.1
= control target key start
LH: loop header
LB: loop body
LE: loop exit
PB: predicated region body
PF: predicated region fallthrough
CT: control target
= control target key end

     0   :  { %10 = vsyncpa [#allocation3], 0  ;;  %s961_s0 = inlined_call_operand.vmem [shape: bf16[2,1,2,11,4], index: 0, kind: input, shape index: {}]   ;;  %s962_s1 = inlined_call_operand.vmem [shape: bf16[12,8], index: 1, kind: input, shape index: {}]   ;;  %s963_s2 = inlined_call_operand.vmem [shape: bf16[24,8], index: 2, kind: input, shape index: {}]   ;;  %s964_s3 = inlined_call_operand.vmem [shape: bf16[4,8], index: 3, kind: input, shape index: {}]   ;;  %s965_s4 = inlined_call_operand.vmem [shape: f32[1,8], index: 4, kind: input, shape index: {}]   ;;  %s966_s5 = inlined_call_operand.hbm [shape: f32[2,8,8], index: 5, kind: output, shape index: {}]  }
   0x1   :  { %12 = vsyncpa [#allocation3 + $0x1], 0  ;;  %s825_s18 = smov 0   ;;  %s827_s19 = smov 0  }
   0x2   :  { %s829_s20 = smov 0   ;;  %s831_s21 = smov 0  }
   0x3   :  { %s833_s22 = smov 0   ;;  %s835_s23 = smov 0  }
   0x4 LB: > { %s595_s24 = sadd.s32 4294967295, %s787_s23   ;;  %s596_s25 = sadd.s32 4294967294, %s787_s23   ;;  %s787_s23 = sphi %s835_s23, %s18_s23   ;;  %s783_s22 = sphi %s833_s22, %s973_s22   ;;  %s779_s21 = sphi %s831_s21, %s972_s21   ;;  %s775_s20 = sphi %s829_s20, %s971_s20   ;;  %s771_s19 = sphi %s827_s19, %s970_s19   ;;  %s767_s18 = sphi %s825_s18, %s969_s18  }
   0x5   : > { %s30_s26 = sadd.s32 1, %s783_s22  ;;  %s151_s27 = sadd.s32 1, %s775_s20 }
   0x6   : > { %p32_p0 = scmp.ge.s32.totalorder %s30_s26, 2  ;;  %p161_p1 = scmp.ne.s32.totalorder %s775_s20, %s771_s19 }
   0x7   : > { %p162_p2 = scmp.eq.s32.totalorder %s595_s24, 1  ;;  %p167_p3 = scmp.ne.s32.totalorder %s771_s19, %s767_s18 }
   0x8   : > { %s975_s26 = smov (%p32_p0, %s30_s26), 0  ;;  %p168_p5 = scmp.eq.s32.totalorder %s596_s25, 1 }
   0x9   : > { %p865_p4 = por %p162_p2, %p161_p1  ;;  %s146_s29 = ssub.s32 %s783_s22, %s975_s26 }
   0xa   : > { %p599_p6 = scmp.ge.s32.totalorder %s787_s23, 1  ;;  %p149_p7 = scmp.eq.s32.totalorder %s146_s29, 0 }
   0xb   : > { %p872_p8 = por %p168_p5, %p167_p3  ;;  %p210_p9 = scmp.lt.s32.totalorder %s787_s23, 3 }
   0xc   : > { %s878_s6 = scalar_select %p149_p7, %s775_s20, %s151_s27  }
   0xd   : > { %p211_p10 = pnand %p599_p6, %p210_p9 }
   0xe   : > { %p242_p11 = scmp.lt.s32.totalorder (!%p211_p10), %s779_s21, 1  ;;  %s791_s14 = smov (!%p211_p10), 4  }
   0xf   : > { %214 = sbr.rel (%p211_p10) target bundleno = 686 (0x2ae), region = 40  ;;  %s792_s15 = smov (!%p211_p10), 8  }
  0x10   : > { %s793_s7 = smov (!%p211_p10), 16   ;;  %s239_s8 = sand.u32 (!%p211_p10), 1, %s771_s19  }
  0x11   : > { %s600_s11 = sshll.u32 (!%p211_p10), %s239_s8, 3  ;;  %s615_s12 = sshll.u32 (!%p211_p10), %s779_s21, 7 }
  0x12   : > { %s914_s17 = scalar_lea.hbm (!%p211_p10), %s966_s5, %s615_s12  ;;  %s794_s25 = smov (!%p211_p10), [#allocation2]  }
  0x13   : > { %s715_s27 = sshll.u32 (!%p211_p10), %s794_s25, 4  ;;  %s716_s27 = int_to_ptr.vmem [resolvable:$false] %s715_s27 }
  0x14   : > { %v789_v0 = vmov 0.0   ;;  %v708_v1 = vld [vmem:[%s962_s1] sm:$0x3f]   ;;  %vm297_vm0 = vcmask 1045504   ;;  %s243_s9 = scalar_select %p242_p11, %s779_s21, 1  ;;  %vm790_vm1 = vmmov 0   ;;  %v343_v21 = vlaneseq }
  0x15   : > { %626 = vmatprep.subr.bf16.mxu0 %v789_v0  ;;  %632 = vmatprep.subr.bf16.mxu1 %v789_v0  ;;  %v299_v2 = vsel %vm297_vm0, %v708_v1, 0  ;;  %vm283_vm2 = vcmask 31744   ;;  %vm286_vm3 = vcmask 64512   ;;  %vm294_vm4 = vcmask 97280   ;;  %v383_v16 = vld [vmem:[%s964_s3] sm:$0x3] }
  0x16   : > { %628 = vmatprep.mubr.msk.bf16.mxu0 %vm790_vm1, %v789_v0  ;;  %634 = vmatprep.mubr.msk.bf16.mxu1 %vm790_vm1, %v789_v0  ;;  %s618_s10 = sshll.u32 %s243_s9, 4  ;;  %vm401_vm5 = vcmask 1041408   ;;  %v709_v17 = vld [vmem:[%s963_s2 + $0x8] ss:$0 sps:$4 sm:$0xff]   ;;  %vm457_vm6 = vcmask 1043456   ;;  %v344_v22 = vshrl.u32 %v343_v21, 7 }
  0x17   : > { %627 = vmatpush3.bf16.msra.mxu0 %v299_v2  ;;  %s250_s13 = scalar_lea.vmem %s961_s0, %s618_s10  ;;  %v403_v18 = vsel %vm401_vm5, %v383_v16, 0  ;;  %v459_v20 = vsel %vm457_vm6, %v709_v17, 0  ;;  %v710_v29 = vld [vmem:[%s963_s2] sm:$0xff]   ;;  %vm380_vm9 = vcmask 130048   ;;  %vm454_vm10 = vcmask 195584   ;;  %s504_s21 = scalar_lea.sflag [#allocation3], %s239_s8 }
  0x18   : > { %638 = vmatprep.subr.bf16.mxu0 %v789_v0  ;;  %v706_v3 = vld [vmem:[%s250_s13 + $0x8] sm:$0x3f]   ;;  %v707_v4 = vld [vmem:[%s250_s13] sm:$0x3f]   ;;  %633 = vmatpush3.bf16.msra.mxu1 %v403_v18  ;;  %v345_v23 = vadd.s32 8, %v344_v22  ;;  %v348_v25 = vadd.s32 4294967295, %v344_v22 }
  0x19   : > { %272 = vrot.lane.b32.xlu0 %v706_v3, %s791_s14  ;;  %v275_v5 = vshrl.u32 %v707_v4, 16  ;;  %v277_v6 = vshll.u32 %v707_v4, 16  ;;  %v394_v13 = vshll.u32 %v706_v3, 16  ;;  %v392_v14 = vshrl.u32 %v706_v3, 16  ;;  %v609_v49 = vld [vmem:[%s965_s4] ss:$0 sm:$0xff] }
  0x1a   : > { %v349_v26 = vadd.s32 4294967295, %v345_v23  ;;  %vm350_vm7 = vcmp.ge.s32.totalorder %v348_v25, 0  ;;  %s241_s13 = scalar_lea.vmem [#allocation2], %s600_s11  ;;  %s717_s29 = scalar_lea.vmem %s716_s27, 256 }
  0x1b   : > { %v279_v7 = vrot.slane %v277_v6, 1  ;;  %v396_v15 = vrot.slane %v394_v13, 1  ;;  %s518_s14 = sshll.u32 %s241_s13, 4  ;;  %s916_s14 = int_to_ptr.vmem [resolvable:$true] %s518_s14 }
  0x1c   : > { %vm353_vm8 = vcmp.lt.s32.totalorder %v349_v26, 8  ;;  %s711_s24 = scalar_lea.vmem %s916_s14, 128  ;;  %p718_p1 = scmp.lt.s32.totalorder %s916_s14, %s716_s27 }
  0x1d   : > { %v280_v8 = vor.u32 %v279_v7, %v275_v5  ;;  %v397_v19 = vor.u32 %v396_v15, %v392_v14  ;;  %p712_p12 = scmp.ne.s32.totalorder %s916_s14, %s711_s24  ;;  %p719_p2 = scmp.lt.s32.totalorder %s717_s29, %s711_s24 }
  0x1f   : > { %281 = vrot.lane.b32.xlu0 %v280_v8, %s792_s15  ;;  %635 = vmatmul.mubr.msk.bf16.vlgmr.msra.gmra.mxu1 %vm283_vm2, %v397_v19  ;;  %p713_p13 = pnand %p712_p12, %p865_p4  ;;  %p720_p3 = por %p719_p2, %p718_p1 }
  0x21   : > { %p714_p0 = pneg %p713_p13 }
  0x23   : > { %p721_p5 = pnand %p720_p3, %p714_p0 }
  0x8b   : > { %v273_v9 = vpop.permute.xlu0 %272 }
  0x8c   : > { %v285_v10 = vsel %vm283_vm2, %v707_v4, %v273_v9 }
  0x91   : > { %v282_v11 = vpop.permute.xlu0 %281 }
  0x92   : > { %v288_v12 = vsel %vm286_vm3, %v285_v10, %v282_v11 }
  0x93   : > { %629 = vmatmul.mubr.msk.bf16.vlgmr.msra.gmra.mxu0 %vm294_vm4, %v288_v12 }
  0x94   : > { %642 = vmatprep.mubr.msk.bf16.mxu0 %vm790_vm1, %v789_v0  ;;  %639 = vmatpush3.bf16.msra.mxu0 %v459_v20 }
  0x95   : > { %640 = vmatprep.subr.bf16.mxu0 %v789_v0 }
  0x98   : > { %641 = vmatpush3.bf16.msra.mxu0 %v710_v29 }
  0xdf   : > { %v439_v41 = vpop.f32.mrf.mxu1 }
  0xe0   : > { %v440_v50 = vadd.f32 %v609_v49, %v439_v41 }
  0xe1   : > { %v636_v42 = vpop.f32.mrf.mxu1 }
  0xe3   : > { %v442_v43 = vpop.f32.mrf.mxu1 }
  0xe5   : > { %v637_v44 = vpop.f32.mrf.mxu1 }
 0x153   : > { %v335_v24 = vpop.f32.mrf.mxu0 }
 0x154   : > { %v356_v28 = vmax.f32 %v335_v24, 0.0 }
 0x155   : > { %v630_v27 = vpop.f32.mrf.mxu0 }
 0x156   : > { %v362_v33 = vsel %vm350_vm7, %v356_v28, 0.0 }
 0x157   : > { %v338_v30 = vpop.f32.mrf.mxu0 }
 0x158   : > { %v357_v31 = vmax.f32 %v338_v30, 0.0 }
 0x159   : > { %v631_v32 = vpop.f32.mrf.mxu0 }
 0x15a   : > { %v363_v34 = vsel %vm353_vm8, %v357_v31, 0.0 }
 0x15b   : > { %v364_v35 = vpack.c.bf16 %v363_v34, %v362_v33 }
 0x15d   : > { %v368_v36 = vshll.u32 %v364_v35, 16  ;;  %v366_v37 = vshrl.u32 %v364_v35, 16  ;;  %v375_v40 = vrot.slane %v364_v35, 1 }
 0x15f   : > { %v370_v38 = vrot.slane %v368_v36, 1 }
 0x161   : > { %v371_v39 = vor.u32 %v370_v38, %v366_v37 }
 0x163   : > { %372 = vrot.lane.b32.xlu1 %v371_v39, %s792_s15 }
 0x167   : > { %376 = vrot.lane.b32.xlu1 %v375_v40, %s793_s7 }
 0x1d5   : > { %v373_v45 = vpop.permute.xlu1 %372 }
 0x1d6   : > { %v379_v46 = vsel %vm286_vm3, %v364_v35, %v373_v45 }
 0x1d9   : > { %v377_v47 = vpop.permute.xlu1 %376 }
 0x1da   : > { %v382_v48 = vsel %vm380_vm9, %v379_v46, %v377_v47 }
 0x1db   : > { %643 = vmatmul.mubr.msk.bf16.vlgmr.msra.gmra.mxu0 %vm454_vm10, %v382_v48 }
 0x29b   : > { %v495_v51 = vpop.f32.mrf.mxu0 }
 0x29c   : > { %v496_v52 = vadd.f32 %v495_v51, %v440_v50 }
 0x29d   : > { %v644_v53 = vpop.f32.mrf.mxu0 }
 0x29e   : > { %v501_v54 = vmax.f32 %v496_v52, 0.0 }
 0x29f   : > { %v498_v55 = vpop.f32.mrf.mxu0 }
 0x2a0   : > { %502 = vst.msk [vmem:[%s241_s13] sm:$0xff] %vm286_vm3, %v501_v54 }
 0x2a1   : > { %v645_v56 = vpop.f32.mrf.mxu0 }
 0x2a2   : > { %724 = shalt.err (!%p721_p5)
}
 0x2a3   : > { %s725_s7 = scalar_lea.hbm %s914_s17, 128  ;;  %s729_s10 = scalar_lea.hbm %s966_s5, 256 }
 0x2a4   : > { %p726_p6 = scmp.ne.s32.totalorder %s914_s17, %s725_s7  ;;  %p730_p10 = scmp.lt.s32.totalorder %s914_s17, %s966_s5 }
 0x2a5   : > { %p731_p11 = scmp.lt.s32.totalorder %s729_s10, %s725_s7 }
 0x2a6   : > { %p727_p7 = pnand %p726_p6, %p865_p4 }
 0x2a7   : > { %p732_p12 = por %p731_p11, %p730_p10 }
 0x2a8   : > { %p728_p9 = pneg %p727_p7 }
 0x2aa   : > { %p733_p13 = pnand %p732_p12, %p728_p9 }
 0x2ac   : > { %736 = shalt.err (!%p733_p13)
}
 0x2ad   : > { %646 = dma.vmem_to_hbm [thread:$0]  (%p865_p4), %s916_s14, 128, %s914_s17, %s504_s21  }
 0x2ae PF: > { %p652_p0 = scmp.ge.s32.totalorder %s787_s23, 2  ;;  %s530_s13 = sand.u32 1, %s767_s18  }
 0x2af   : > { %s531_s15 = scalar_lea.sflag [#allocation3], %s530_s13 }
 0x2b0   : > { %p649_p1 = pnand %p652_p0, %p872_p8 }
 0x2b2   : > { %p650_p2 = pneg %p649_p1 }
 0x2b4   : > { %762 = dma.done.wait (%p650_p2), %s531_s15, 128  }
 0x2b5   : > { %764 = vsyncadd (%p650_p2), %s531_s15, 4294967168  ;;  %s18_s23 = sadd.s32 1, %s787_s23   ;;  %s969_s18 = smov %s771_s19 }
 0x2b6   : > { %p15_p3 = scmp.ge.s32.totalorder %s18_s23, 4   ;;  %s970_s19 = smov %s775_s20 }
 0x2b7   : > { %s971_s20 = smov %s878_s6  ;;  %s972_s21 = smov %s783_s22 }
 0x2b8   : > { %s973_s22 = smov %s975_s26  ;;  %17 = sbr.rel (!%p15_p3) target bundleno = 4 (0x4), region = 76 }
 0x2bd   :  { %536 = vsyncpa [#allocation3], 1 }
 0x2be   :  { %538 = vsyncpa [#allocation3 + $0x1], 1 }

</bundles_post_ra>
